<compile_context>
chip_gen: v6e
topology: v6e:2x2x1
jax: 0.10.0
libtpu: 0.0.40
codegen_flags: <defaults>
</compile_context>

<pallas_src>
import functools

import jax
import jax.numpy as jnp
from jax.experimental import pallas as pl
from jax.experimental.pallas import tpu as pltpu


def bottleneck_ddr3d_kernel(x_ref, masks_ref, win_ref, w3w_ref, bw_ref,
                            w3h_ref, bh_ref, w3d_ref, bd_ref, wout_ref,
                            o_ref, *, W, HW):
    bf16 = jnp.bfloat16
    S = x_ref.shape[2]                 # D*H*W, flattened spatial (lane axis)
    x = x_ref[0]                       # (Cin, S) f32
    masks = masks_ref[...]             # (6, S)  f32 multiplicative keep-masks

    def dir_conv(w3_ref, b_ref, y, shift, mprev, mnext):
        # 3-tap directional conv as ONE MXU matmul with the taps stacked on the
        # contraction axis:
        #   out = [W_k0 | W_k1 | W_k2] @ [y_{p-1}; y_p; y_{p+1}]      (C,3C)@(3C,S)
        # Neighbors are realigned with pltpu.roll (XLU) and zeroed at the volume
        # boundary by the precomputed keep-masks (broadcast (1,S) multiply).
        y_prev = pltpu.roll(y, shift, axis=1) * mprev        # y[p-1], 0 at lo edge
        y_next = pltpu.roll(y, S - shift, axis=1) * mnext    # y[p+1], 0 at hi edge
        stack = jnp.concatenate([y_prev, y, y_next], axis=0)  # (3C, S) f32, 8-row aligned
        return jnp.dot(w3_ref[...], stack.astype(bf16),
                       preferred_element_type=jnp.float32) + b_ref[...]

    # ---- conv_in: 1x1x1, no bias, ReLU ---------------------------------
    y0 = jnp.maximum(
        jnp.dot(win_ref[...], x.astype(bf16),
                preferred_element_type=jnp.float32), 0.0)

    # ---- conv1x1x3 (along W), bias, ReLU -------------------------------
    y1 = jnp.maximum(
        dir_conv(w3w_ref, bw_ref, y0, 1, masks[0:1], masks[1:2]), 0.0)

    # ---- conv1x3x1 (along H), bias, + y1, ReLU -------------------------
    y2 = jnp.maximum(
        dir_conv(w3h_ref, bh_ref, y1, W, masks[2:3], masks[3:4]) + y1, 0.0)

    # ---- conv3x1x1 (along D), bias, + y2 + y1, ReLU --------------------
    y3 = jnp.maximum(
        dir_conv(w3d_ref, bd_ref, y2, HW, masks[4:5], masks[5:6]) + y2 + y1, 0.0)

    # ---- conv_out: 1x1x1, no bias, + residual(x), ReLU -----------------
    y = jnp.dot(wout_ref[...], y3.astype(bf16),
                preferred_element_type=jnp.float32)
    o_ref[0] = jnp.maximum(y + x, 0.0)


def bottleneck_ddr3d(x_ncdhw, params):
    """params = (w_in, w_w, b_w, w_h, b_h, w_d, b_d, w_out) in PyTorch OIDHW."""
    w_in, w_w, b_w, w_h, b_h, w_d, b_d, w_out = params
    N, Cin, D, H, W = x_ncdhw.shape
    C = w_in.shape[0]
    Cout = w_out.shape[0]
    assert Cin == Cout, "residual=True requires c_in == c_out"
    # Keep the (3C, S) tap stack sublane-tile aligned (f32: multiples of 8;
    # use multiples of 16 for best bf16 packing at production C).
    assert C % 8 == 0, "C must be a multiple of 8 for aligned tap stacking"
    S = D * H * W

    f32, bf16 = jnp.float32, jnp.bfloat16
    # Channels-first already matches NCDHW: just flatten spatial (no transpose).
    x = x_ncdhw.reshape(N, Cin, S).astype(f32)

    # Conv weights (O, I, kD, kH, kW) -> matmul matrices.  Directional convs get
    # their 3 taps stacked along the CONTRACTION axis -> (C, 3C), bf16 operands.
    win_mat = w_in[:, :, 0, 0, 0].astype(bf16)                                    # (C, Cin)
    w3w = jnp.concatenate([w_w[:, :, 0, 0, k] for k in range(3)], axis=1).astype(bf16)  # (C, 3C)
    w3h = jnp.concatenate([w_h[:, :, 0, k, 0] for k in range(3)], axis=1).astype(bf16)
    w3d = jnp.concatenate([w_d[:, :, k, 0, 0] for k in range(3)], axis=1).astype(bf16)
    wout_mat = w_out[:, :, 0, 0, 0].astype(bf16)                                  # (Cout, C)
    bw = b_w.reshape(C, 1).astype(f32)
    bh = b_h.reshape(C, 1).astype(f32)
    bd = b_d.reshape(C, 1).astype(f32)

    # Precomputed boundary keep-masks (1.0 = neighbor exists, 0.0 = volume edge),
    # one (1, S) row per {W,H,D} x {prev,next}.  Computed once, passed as VMEM.
    d_pos, h_pos, w_pos = jnp.meshgrid(
        jnp.arange(D), jnp.arange(H), jnp.arange(W), indexing="ij")
    w_pos = w_pos.reshape(1, S)
    h_pos = h_pos.reshape(1, S)
    d_pos = d_pos.reshape(1, S)
    masks = jnp.concatenate([
        w_pos != 0, w_pos != W - 1,
        h_pos != 0, h_pos != H - 1,
        d_pos != 0, d_pos != D - 1], axis=0).astype(f32)                          # (6, S)

    flops = 2 * N * S * (Cin * C + 3 * (3 * C * C) + C * Cout)
    bytes_accessed = (4 * (x.size + N * Cout * S + masks.size + 3 * C)
                      + 2 * (win_mat.size + w3w.size + w3h.size + w3d.size
                             + wout_mat.size))
    cost = pl.CostEstimate(flops=flops, transcendentals=0,
                           bytes_accessed=bytes_accessed)

    # VMEM budget: double-buffered activation blocks + constants + live f32
    # intermediates, capped per device generation (v7x has only 64 MiB).
    act_bytes = 2 * 4 * S * (Cin + Cout)
    inter_bytes = 4 * S * (6 + 8 * C)
    wgt_bytes = 2 * 2 * (C * Cin + 3 * 3 * C * C + Cout * C) + 4 * 3 * C
    est = act_bytes + inter_bytes + wgt_bytes
    try:
        vmem_cap = pltpu.get_tpu_info().vmem_capacity_bytes
    except Exception:
        vmem_cap = 64 * 1024 * 1024          # v7x floor — safe on every generation
    vmem_limit = int(min(0.8 * vmem_cap, max(16 * 1024 * 1024, 2 * est)))

    kernel = functools.partial(bottleneck_ddr3d_kernel, W=W, HW=H * W)
    const2 = lambda b: (0, 0)

    out = pl.pallas_call(
        kernel,
        out_shape=jax.ShapeDtypeStruct((N, Cout, S), f32),
        grid_spec=pltpu.PrefetchScalarGridSpec(
            num_scalar_prefetch=0,
            grid=(N,),
            in_specs=[
                pl.BlockSpec((1, Cin, S), lambda b: (b, 0, 0)),
                pl.BlockSpec((6, S), const2),
                pl.BlockSpec((C, Cin), const2),
                pl.BlockSpec((C, 3 * C), const2),
                pl.BlockSpec((C, 1), const2),
                pl.BlockSpec((C, 3 * C), const2),
                pl.BlockSpec((C, 1), const2),
                pl.BlockSpec((C, 3 * C), const2),
                pl.BlockSpec((C, 1), const2),
                pl.BlockSpec((Cout, C), const2),
            ],
            out_specs=pl.BlockSpec((1, Cout, S), lambda b: (b, 0, 0)),
        ),
        compiler_params=pltpu.CompilerParams(
            dimension_semantics=("parallel",),
            vmem_limit_bytes=vmem_limit),
        cost_estimate=cost,
    )(x, masks, win_mat, w3w, bw, w3h, bh, w3d, bd, wout_mat)

    return out.reshape(N, Cout, D, H, W)


def reference_forward(x, params):
    """Pure-JAX f32 reference mirroring the PyTorch forward (NCDHW)."""
    w_in, w_w, b_w, w_h, b_h, w_d, b_d, w_out = params
    dn = ("NCDHW", "OIDHW", "NCDHW")

    def conv(inp, w, pad):
        return jax.lax.conv_general_dilated(inp, w, (1, 1, 1), pad,
                                            dimension_numbers=dn)

    def bias(b):
        return b[None, :, None, None, None]

    y0 = jax.nn.relu(conv(x, w_in, [(0, 0), (0, 0), (0, 0)]))
    y1 = jax.nn.relu(conv(y0, w_w, [(0, 0), (0, 0), (1, 1)]) + bias(b_w))
    y2 = jax.nn.relu(conv(y1, w_h, [(0, 0), (1, 1), (0, 0)]) + bias(b_h) + y1)
    y3 = jax.nn.relu(conv(y2, w_d, [(1, 1), (0, 0), (0, 0)]) + bias(b_d) + y2 + y1)
    y = conv(y3, w_out, [(0, 0), (0, 0), (0, 0)])
    return jax.nn.relu(y + x)


if __name__ == "__main__":
    # Small shapes consistent with the module: c_in = c_out (residual), 3D volume.
    N, Cin, C, Cout = 2, 8, 8, 8
    D, H, W = 8, 8, 8

    key = jax.random.PRNGKey(0)
    ks = jax.random.split(key, 9)
    scale = 0.1
    x = jax.random.normal(ks[0], (N, Cin, D, H, W), jnp.float32)
    w_in = scale * jax.random.normal(ks[1], (C, Cin, 1, 1, 1), jnp.float32)
    w_w = scale * jax.random.normal(ks[2], (C, C, 1, 1, 3), jnp.float32)
    b_w = scale * jax.random.normal(ks[3], (C,), jnp.float32)
    w_h = scale * jax.random.normal(ks[4], (C, C, 1, 3, 1), jnp.float32)
    b_h = scale * jax.random.normal(ks[5], (C,), jnp.float32)
    w_d = scale * jax.random.normal(ks[6], (C, C, 3, 1, 1), jnp.float32)
    b_d = scale * jax.random.normal(ks[7], (C,), jnp.float32)
    w_out = scale * jax.random.normal(ks[8], (Cout, C, 1, 1, 1), jnp.float32)
    params = (w_in, w_w, b_w, w_h, b_h, w_d, b_d, w_out)

    out = jax.block_until_ready(bottleneck_ddr3d(x, params))
    ref = jax.block_until_ready(reference_forward(x, params))

    assert out.shape == (N, Cout, D, H, W), out.shape
    # bf16 matmul operands (f32 accumulation) -> loosened tolerance vs f32 ref.
    if not jnp.allclose(out, ref, rtol=2e-2, atol=2e-2):
        raise AssertionError(
            f"mismatch vs reference: max abs err = {jnp.max(jnp.abs(out - ref))}")
    print("KERNEL_OK")
</pallas_src>

<mosaic_0001>
module attributes {stable_mosaic.version = 11 : i64} {
  func.func @bottleneck_ddr3d_kernel(%arg0: i32, %arg1: memref<1x8x512xf32, #tpu.memory_space<vmem>>, %arg2: memref<6x512xf32, #tpu.memory_space<vmem>>, %arg3: memref<8x8xbf16, #tpu.memory_space<vmem>>, %arg4: memref<8x24xbf16, #tpu.memory_space<vmem>>, %arg5: memref<8x1xf32, #tpu.memory_space<vmem>>, %arg6: memref<8x24xbf16, #tpu.memory_space<vmem>>, %arg7: memref<8x1xf32, #tpu.memory_space<vmem>>, %arg8: memref<8x24xbf16, #tpu.memory_space<vmem>>, %arg9: memref<8x1xf32, #tpu.memory_space<vmem>>, %arg10: memref<8x8xbf16, #tpu.memory_space<vmem>>, %arg11: memref<1x8x512xf32, #tpu.memory_space<vmem>>) attributes {dimension_semantics = [#tpu.dimension_semantics<parallel>], iteration_bounds = array<i64: 2>, scalar_prefetch = 0 : i64, scratch_operands = 0 : i64, tpu.core_type = #tpu.core_type<tc>, window_params = [{transform_indices = @transform_0, window_bounds = array<i64: 1, 8, 512>}, {pipeline_mode = #tpu.pipeline_mode<synchronous>, transform_indices = @transform_1, window_bounds = array<i64: 6, 512>}, {pipeline_mode = #tpu.pipeline_mode<synchronous>, transform_indices = @transform_2, window_bounds = array<i64: 8, 8>}, {pipeline_mode = #tpu.pipeline_mode<synchronous>, transform_indices = @transform_3, window_bounds = array<i64: 8, 24>}, {pipeline_mode = #tpu.pipeline_mode<synchronous>, transform_indices = @transform_4, window_bounds = array<i64: 8, 1>}, {pipeline_mode = #tpu.pipeline_mode<synchronous>, transform_indices = @transform_5, window_bounds = array<i64: 8, 24>}, {pipeline_mode = #tpu.pipeline_mode<synchronous>, transform_indices = @transform_6, window_bounds = array<i64: 8, 1>}, {pipeline_mode = #tpu.pipeline_mode<synchronous>, transform_indices = @transform_7, window_bounds = array<i64: 8, 24>}, {pipeline_mode = #tpu.pipeline_mode<synchronous>, transform_indices = @transform_8, window_bounds = array<i64: 8, 1>}, {pipeline_mode = #tpu.pipeline_mode<synchronous>, transform_indices = @transform_9, window_bounds = array<i64: 8, 8>}, {transform_indices = @transform_10, window_bounds = array<i64: 1, 8, 512>}]} {
    %c0 = arith.constant 0 : index
    %c0_0 = arith.constant 0 : index
    %c0_1 = arith.constant 0 : index
    %0 = vector.load %arg1[%c0, %c0_0, %c0_1] : memref<1x8x512xf32, #tpu.memory_space<vmem>>, vector<1x8x512xf32>
    %1 = vector.shape_cast %0 : vector<1x8x512xf32> to vector<8x512xf32>
    %c0_2 = arith.constant 0 : index
    %c0_3 = arith.constant 0 : index
    %2 = vector.load %arg2[%c0_2, %c0_3] : memref<6x512xf32, #tpu.memory_space<vmem>>, vector<6x512xf32>
    %c0_4 = arith.constant 0 : index
    %c0_5 = arith.constant 0 : index
    %3 = vector.load %arg3[%c0_4, %c0_5] : memref<8x8xbf16, #tpu.memory_space<vmem>>, vector<8x8xbf16>
    %4 = arith.truncf %1 : vector<8x512xf32> to vector<8x512xbf16>
    %cst = arith.constant dense<0.000000e+00> : vector<8x512xf32>
    %5 = tpu.matmul %3, %4, %cst {dimension_numbers = #tpu.dot_dimension_numbers<[1], [0], [0], [1], [0, 0, 1, 1], [], []>} : vector<8x8xbf16>, vector<8x512xbf16>, vector<8x512xf32> -> vector<8x512xf32>
    %cst_6 = arith.constant 0.000000e+00 : f32
    %6 = vector.broadcast %cst_6 : f32 to vector<8x512xf32>
    %7 = arith.maximumf %5, %6 : vector<8x512xf32>
    %8 = vector.extract_strided_slice %2 {offsets = [0, 0], sizes = [1, 512], strides = [1, 1]} : vector<6x512xf32> to vector<1x512xf32>
    %9 = vector.extract_strided_slice %2 {offsets = [1, 0], sizes = [1, 512], strides = [1, 1]} : vector<6x512xf32> to vector<1x512xf32>
    %c1_i32 = arith.constant 1 : i32
    %10 = tpu.dynamic_rotate %7 by %c1_i32 dim 1 : vector<8x512xf32>, i32 -> vector<8x512xf32>
    %11 = vector.broadcast %8 : vector<1x512xf32> to vector<8x512xf32>
    %12 = arith.mulf %10, %11 : vector<8x512xf32>
    %c511_i32 = arith.constant 511 : i32
    %13 = tpu.dynamic_rotate %7 by %c511_i32 dim 1 : vector<8x512xf32>, i32 -> vector<8x512xf32>
    %14 = vector.broadcast %9 : vector<1x512xf32> to vector<8x512xf32>
    %15 = arith.mulf %13, %14 : vector<8x512xf32>
    %16 = tpu.concatenate %12, %7, %15 in 0 : vector<8x512xf32>, vector<8x512xf32>, vector<8x512xf32> -> vector<24x512xf32>
    %c0_7 = arith.constant 0 : index
    %c0_8 = arith.constant 0 : index
    %17 = vector.load %arg4[%c0_7, %c0_8] : memref<8x24xbf16, #tpu.memory_space<vmem>>, vector<8x24xbf16>
    %18 = arith.truncf %16 : vector<24x512xf32> to vector<24x512xbf16>
    %cst_9 = arith.constant dense<0.000000e+00> : vector<8x512xf32>
    %19 = tpu.matmul %17, %18, %cst_9 {dimension_numbers = #tpu.dot_dimension_numbers<[1], [0], [0], [1], [0, 0, 1, 1], [], []>} : vector<8x24xbf16>, vector<24x512xbf16>, vector<8x512xf32> -> vector<8x512xf32>
    %c0_10 = arith.constant 0 : index
    %c0_11 = arith.constant 0 : index
    %20 = vector.load %arg5[%c0_10, %c0_11] : memref<8x1xf32, #tpu.memory_space<vmem>>, vector<8x1xf32>
    %21 = vector.broadcast %20 : vector<8x1xf32> to vector<8x512xf32>
    %22 = arith.addf %19, %21 : vector<8x512xf32>
    %cst_12 = arith.constant 0.000000e+00 : f32
    %23 = vector.broadcast %cst_12 : f32 to vector<8x512xf32>
    %24 = arith.maximumf %22, %23 : vector<8x512xf32>
    %25 = vector.extract_strided_slice %2 {offsets = [2, 0], sizes = [1, 512], strides = [1, 1]} : vector<6x512xf32> to vector<1x512xf32>
    %26 = vector.extract_strided_slice %2 {offsets = [3, 0], sizes = [1, 512], strides = [1, 1]} : vector<6x512xf32> to vector<1x512xf32>
    %c8_i32 = arith.constant 8 : i32
    %27 = tpu.dynamic_rotate %24 by %c8_i32 dim 1 : vector<8x512xf32>, i32 -> vector<8x512xf32>
    %28 = vector.broadcast %25 : vector<1x512xf32> to vector<8x512xf32>
    %29 = arith.mulf %27, %28 : vector<8x512xf32>
    %c504_i32 = arith.constant 504 : i32
    %30 = tpu.dynamic_rotate %24 by %c504_i32 dim 1 : vector<8x512xf32>, i32 -> vector<8x512xf32>
    %31 = vector.broadcast %26 : vector<1x512xf32> to vector<8x512xf32>
    %32 = arith.mulf %30, %31 : vector<8x512xf32>
    %33 = tpu.concatenate %29, %24, %32 in 0 : vector<8x512xf32>, vector<8x512xf32>, vector<8x512xf32> -> vector<24x512xf32>
    %c0_13 = arith.constant 0 : index
    %c0_14 = arith.constant 0 : index
    %34 = vector.load %arg6[%c0_13, %c0_14] : memref<8x24xbf16, #tpu.memory_space<vmem>>, vector<8x24xbf16>
    %35 = arith.truncf %33 : vector<24x512xf32> to vector<24x512xbf16>
    %cst_15 = arith.constant dense<0.000000e+00> : vector<8x512xf32>
    %36 = tpu.matmul %34, %35, %cst_15 {dimension_numbers = #tpu.dot_dimension_numbers<[1], [0], [0], [1], [0, 0, 1, 1], [], []>} : vector<8x24xbf16>, vector<24x512xbf16>, vector<8x512xf32> -> vector<8x512xf32>
    %c0_16 = arith.constant 0 : index
    %c0_17 = arith.constant 0 : index
    %37 = vector.load %arg7[%c0_16, %c0_17] : memref<8x1xf32, #tpu.memory_space<vmem>>, vector<8x1xf32>
    %38 = vector.broadcast %37 : vector<8x1xf32> to vector<8x512xf32>
    %39 = arith.addf %36, %38 : vector<8x512xf32>
    %40 = arith.addf %39, %24 : vector<8x512xf32>
    %cst_18 = arith.constant 0.000000e+00 : f32
    %41 = vector.broadcast %cst_18 : f32 to vector<8x512xf32>
    %42 = arith.maximumf %40, %41 : vector<8x512xf32>
    %43 = vector.extract_strided_slice %2 {offsets = [4, 0], sizes = [1, 512], strides = [1, 1]} : vector<6x512xf32> to vector<1x512xf32>
    %44 = vector.extract_strided_slice %2 {offsets = [5, 0], sizes = [1, 512], strides = [1, 1]} : vector<6x512xf32> to vector<1x512xf32>
    %c64_i32 = arith.constant 64 : i32
    %45 = tpu.dynamic_rotate %42 by %c64_i32 dim 1 : vector<8x512xf32>, i32 -> vector<8x512xf32>
    %46 = vector.broadcast %43 : vector<1x512xf32> to vector<8x512xf32>
    %47 = arith.mulf %45, %46 : vector<8x512xf32>
    %c448_i32 = arith.constant 448 : i32
    %48 = tpu.dynamic_rotate %42 by %c448_i32 dim 1 : vector<8x512xf32>, i32 -> vector<8x512xf32>
    %49 = vector.broadcast %44 : vector<1x512xf32> to vector<8x512xf32>
    %50 = arith.mulf %48, %49 : vector<8x512xf32>
    %51 = tpu.concatenate %47, %42, %50 in 0 : vector<8x512xf32>, vector<8x512xf32>, vector<8x512xf32> -> vector<24x512xf32>
    %c0_19 = arith.constant 0 : index
    %c0_20 = arith.constant 0 : index
    %52 = vector.load %arg8[%c0_19, %c0_20] : memref<8x24xbf16, #tpu.memory_space<vmem>>, vector<8x24xbf16>
    %53 = arith.truncf %51 : vector<24x512xf32> to vector<24x512xbf16>
    %cst_21 = arith.constant dense<0.000000e+00> : vector<8x512xf32>
    %54 = tpu.matmul %52, %53, %cst_21 {dimension_numbers = #tpu.dot_dimension_numbers<[1], [0], [0], [1], [0, 0, 1, 1], [], []>} : vector<8x24xbf16>, vector<24x512xbf16>, vector<8x512xf32> -> vector<8x512xf32>
    %c0_22 = arith.constant 0 : index
    %c0_23 = arith.constant 0 : index
    %55 = vector.load %arg9[%c0_22, %c0_23] : memref<8x1xf32, #tpu.memory_space<vmem>>, vector<8x1xf32>
    %56 = vector.broadcast %55 : vector<8x1xf32> to vector<8x512xf32>
    %57 = arith.addf %54, %56 : vector<8x512xf32>
    %58 = arith.addf %57, %42 : vector<8x512xf32>
    %59 = arith.addf %58, %24 : vector<8x512xf32>
    %cst_24 = arith.constant 0.000000e+00 : f32
    %60 = vector.broadcast %cst_24 : f32 to vector<8x512xf32>
    %61 = arith.maximumf %59, %60 : vector<8x512xf32>
    %c0_25 = arith.constant 0 : index
    %c0_26 = arith.constant 0 : index
    %62 = vector.load %arg10[%c0_25, %c0_26] : memref<8x8xbf16, #tpu.memory_space<vmem>>, vector<8x8xbf16>
    %63 = arith.truncf %61 : vector<8x512xf32> to vector<8x512xbf16>
    %cst_27 = arith.constant dense<0.000000e+00> : vector<8x512xf32>
    %64 = tpu.matmul %62, %63, %cst_27 {dimension_numbers = #tpu.dot_dimension_numbers<[1], [0], [0], [1], [0, 0, 1, 1], [], []>} : vector<8x8xbf16>, vector<8x512xbf16>, vector<8x512xf32> -> vector<8x512xf32>
    %65 = arith.addf %64, %1 : vector<8x512xf32>
    %cst_28 = arith.constant 0.000000e+00 : f32
    %66 = vector.broadcast %cst_28 : f32 to vector<8x512xf32>
    %67 = arith.maximumf %65, %66 : vector<8x512xf32>
    %c0_29 = arith.constant 0 : index
    %c0_30 = arith.constant 0 : index
    %c0_31 = arith.constant 0 : index
    %68 = vector.load %arg11[%c0_29, %c0_30, %c0_31] : memref<1x8x512xf32, #tpu.memory_space<vmem>>, vector<1x8x512xf32>
    %69 = vector.shape_cast %68 : vector<1x8x512xf32> to vector<8x512xf32>
    %70 = vector.shape_cast %67 : vector<8x512xf32> to vector<1x8x512xf32>
    tpu.vector_store %arg11[%c0_29, %c0_30, %c0_31], %70 {strides = array<i32>} : memref<1x8x512xf32, #tpu.memory_space<vmem>>, vector<1x8x512xf32>,
    return
  }
  func.func @transform_0(%arg0: i32) -> (i32, i32, i32) {
    %c0_i32 = arith.constant 0 : i32
    %c0_i32_0 = arith.constant 0 : i32
    %c0_i32_1 = arith.constant 0 : i32
    return %arg0, %c0_i32, %c0_i32_0 : i32, i32, i32
  }
  func.func @transform_1(%arg0: i32) -> (i32, i32) {
    %c0_i32 = arith.constant 0 : i32
    %c0_i32_0 = arith.constant 0 : i32
    %c0_i32_1 = arith.constant 0 : i32
    return %c0_i32, %c0_i32_0 : i32, i32
  }
  func.func @transform_2(%arg0: i32) -> (i32, i32) {
    %c0_i32 = arith.constant 0 : i32
    %c0_i32_0 = arith.constant 0 : i32
    %c0_i32_1 = arith.constant 0 : i32
    return %c0_i32, %c0_i32_0 : i32, i32
  }
  func.func @transform_3(%arg0: i32) -> (i32, i32) {
    %c0_i32 = arith.constant 0 : i32
    %c0_i32_0 = arith.constant 0 : i32
    %c0_i32_1 = arith.constant 0 : i32
    return %c0_i32, %c0_i32_0 : i32, i32
  }
  func.func @transform_4(%arg0: i32) -> (i32, i32) {
    %c0_i32 = arith.constant 0 : i32
    %c0_i32_0 = arith.constant 0 : i32
    %c0_i32_1 = arith.constant 0 : i32
    return %c0_i32, %c0_i32_0 : i32, i32
  }
  func.func @transform_5(%arg0: i32) -> (i32, i32) {
    %c0_i32 = arith.constant 0 : i32
    %c0_i32_0 = arith.constant 0 : i32
    %c0_i32_1 = arith.constant 0 : i32
    return %c0_i32, %c0_i32_0 : i32, i32
  }
  func.func @transform_6(%arg0: i32) -> (i32, i32) {
    %c0_i32 = arith.constant 0 : i32
    %c0_i32_0 = arith.constant 0 : i32
    %c0_i32_1 = arith.constant 0 : i32
    return %c0_i32, %c0_i32_0 : i32, i32
  }
  func.func @transform_7(%arg0: i32) -> (i32, i32) {
    %c0_i32 = arith.constant 0 : i32
    %c0_i32_0 = arith.constant 0 : i32
    %c0_i32_1 = arith.constant 0 : i32
    return %c0_i32, %c0_i32_0 : i32, i32
  }
  func.func @transform_8(%arg0: i32) -> (i32, i32) {
    %c0_i32 = arith.constant 0 : i32
    %c0_i32_0 = arith.constant 0 : i32
    %c0_i32_1 = arith.constant 0 : i32
    return %c0_i32, %c0_i32_0 : i32, i32
  }
  func.func @transform_9(%arg0: i32) -> (i32, i32) {
    %c0_i32 = arith.constant 0 : i32
    %c0_i32_0 = arith.constant 0 : i32
    %c0_i32_1 = arith.constant 0 : i32
    return %c0_i32, %c0_i32_0 : i32, i32
  }
  func.func @transform_10(%arg0: i32) -> (i32, i32, i32) {
    %c0_i32 = arith.constant 0 : i32
    %c0_i32_0 = arith.constant 0 : i32
    %c0_i32_1 = arith.constant 0 : i32
    return %arg0, %c0_i32, %c0_i32_0 : i32, i32, i32
  }
}

</mosaic_0001>

<bundles_post_ra>
// kernel: tpu_custom_call.1
= control target key start
LH: loop header
LB: loop body
LE: loop exit
PB: predicated region body
PF: predicated region fallthrough
CT: control target
= control target key end

     0   :  { %s1962_s0 = inlined_call_operand.hbm [shape: f32[2,8,512], index: 0, kind: input, shape index: {}]   ;;  %s1963_s1 = inlined_call_operand.hbm [shape: f32[6,512], index: 1, kind: input, shape index: {}]   ;;  %s1964_s2 = inlined_call_operand.vmem [shape: bf16[8,8], index: 2, kind: input, shape index: {}]   ;;  %s1965_s3 = inlined_call_operand.vmem [shape: bf16[8,24], index: 3, kind: input, shape index: {}]   ;;  %s1966_s4 = inlined_call_operand.vmem [shape: f32[8,1], index: 4, kind: input, shape index: {}]   ;;  %s1967_s5 = inlined_call_operand.vmem [shape: bf16[8,24], index: 5, kind: input, shape index: {}]   ;;  %s1968_s6 = inlined_call_operand.vmem [shape: f32[8,1], index: 6, kind: input, shape index: {}]   ;;  %s1969_s7 = inlined_call_operand.vmem [shape: bf16[8,24], index: 7, kind: input, shape index: {}]   ;;  %s1970_s8 = inlined_call_operand.vmem [shape: f32[8,1], index: 8, kind: input, shape index: {}]   ;;  %s1971_s9 = inlined_call_operand.vmem [shape: bf16[8,8], index: 9, kind: input, shape index: {}]   ;;  %s1972_s10 = inlined_call_operand.hbm [shape: f32[2,8,512], index: 10, kind: output, shape index: {}]  }
   0x1   :  { %1981 = sst [smem:[#allocation15_spill]] %s1963_s1 }
   0x2   :  { %15 = vsyncpa [#allocation3], 0 }
   0x3   :  { %17 = vsyncpa [#allocation3 + $0x1], 0 }
   0x4   :  { %18 = vsyncpa [#allocation6], 0 }
   0x5   :  { %19 = vsyncpa [#allocation4], 0 }
   0x6   :  { %21 = vsyncpa [#allocation4 + $0x1], 0  ;;  %s1550_s13 = smov 0   ;;  %s1552_s14 = smov 0  }
   0x7   :  { %s1554_s15 = smov 0   ;;  %s1556_s16 = smov 0  }
   0x8 LB: > { %1982 = sst [smem:[#allocation11_spill]] %s1480_s15  ;;  %s1571_s17 = sadd.s32 4294967295, %s1484_s16   ;;  %s1484_s16 = sphi %s1556_s16, %s2003_s16   ;;  %s1480_s15 = sphi %s1554_s15, %s2005_s15   ;;  %s1476_s14 = sphi %s1552_s14, %s2007_s14   ;;  %s1472_s13 = sphi %s1550_s13, %s2006_s13  }
   0x9   : > { %1983 = sst [smem:[#allocation12_spill]] %s1484_s16  ;;  %s1259_s18 = sadd.s32 4294967294, %s1484_s16  }
   0xa   : > { %p47_p0 = scmp.ne.s32.totalorder %s1476_s14, %s1472_s13  ;;  %p1973_p1 = scmp.eq.s32.totalorder %s1571_s17, 0 }
   0xb   : > { %p266_p3 = scmp.eq.s32.totalorder %s1259_s18, 1  ;;  %p1260_p5 = scmp.ge.s32.totalorder %s1484_s16, 1 }
   0xc   : > { %p1580_p4 = por %p1973_p1, %p47_p0  ;;  %p273_p7 = scmp.lt.s32.totalorder %s1484_s16, 3 }
   0xd   : > { %p1585_p6 = por %p266_p3, %p47_p0  ;;  %s1486_s22 = smov [#allocation5]  }
   0xe   : > { %s1984_s19 = scalar_select %p1580_p4, 1, 0 }
   0xf   : > { %s1985_s20 = scalar_select %p1585_p6, 1, 0 }
  0x10   : > { %p1590_p8 = pnand %p1260_p5, %p273_p7  ;;  %s286_s23 = sshll.u32 %s1486_s22, 4  ;;  %s287_s23 = int_to_ptr.vmem [resolvable:$true] %s286_s23 }
  0x11   : > { %s1598_s24 = sadd.s32 1, %s1484_s16   ;;  %s34_s28 = sadd.s32 1, %s1480_s15 }
  0x12   : > { %s1986_s21 = scalar_select %p1590_p8, 1, 0 }
  0x13   : > { %p1305_p10 = pneg %p1590_p8  ;;  %1987 = sst [smem:[#allocation13_spill]] %s1598_s24 }
  0x14   : > { %s31_s26 = ssub.s32 %s1484_s16, %s1598_s24  ;;  %p41_p13 = scmp.ne.s32.totalorder %s1480_s15, %s1476_s14 }
  0x15   : > { %p1602_p11 = pnand %p1305_p10, %p1973_p1  ;;  %p1608_p12 = scmp.eq.s32.totalorder %s31_s26, 0 }
  0x16   : > { %s1373_s29 = scalar_lea.vmem %s287_s23, 512  ;;  %p1381_p9 = scmp.lt.s32.totalorder %s287_s23, %s287_s23 }
  0x17   : > { %p1364_p0 = pneg %p1602_p11  ;;  %p1374_p3 = scmp.ne.s32.totalorder %s287_s23, %s1373_s29 }
  0x18   : > { %p1382_p2 = scmp.lt.s32.totalorder %s1373_s29, %s1373_s29 }
  0x19   : > { %p1376_p5 = pnand %p1374_p3, %p1364_p0 }
  0x1a   : > { %p1383_p10 = por %p1382_p2, %p1381_p9 }
  0x1b   : > { %p1377_p7 = pneg %p1376_p5 }
  0x1d   : > { %p1384_p1 = pnand %p1383_p10, %p1377_p7 }
  0x1f   : > { %1387 = shalt.err (!%p1384_p1)
}
  0x20   : > { %s1990_s1 = sld [smem:[#allocation15_spill]]  ;;  %p42_p1 = scmp.eq.s32.totalorder %s1484_s16, 0 }
  0x21   : > { %s1625_s12 = scalar_select %p1608_p12, %s1480_s15, %s34_s28  }
  0x22   : > { %p1992_p2 = scmp.eq.s32.totalorder %s1571_s17, 1  ;;  %p1318_p0 = scmp.lt.s32.totalorder %s1484_s16, 2 }
  0x23   : > { %1991 = sst [smem:[#allocation14_spill]] %s1625_s12  ;;  %s321_s22 = sand.u32 1, %s1480_s15  }
  0x24   : > { %p1633_p9 = por %p1992_p2, %p41_p13  ;;  %p43_p3 = por %p42_p1, %p41_p13 }
  0x25   : > { %s1263_s25 = sshll.u32 %s321_s22, 5  ;;  %s1295_s26 = sshll.u32 %s1484_s16, 9 }
  0x26   : > { %1308 = dma.hbm_to_vmem [thread:$0]  (!%p1602_p11), %s1990_s1, 512, %s287_s23, [#allocation6]  }
  0x27   : > { %s1993_s18 = scalar_select %p1633_p9, 1, 0 }
  0x28   : > { %s1646_s23 = scalar_lea.hbm %s1962_s0, %s1295_s26  ;;  %s325_s27 = scalar_lea.vmem [#allocation2], %s1263_s25 }
  0x29   : > { %s333_s28 = sshll.u32 %s325_s27, 4  ;;  %p1648_p11 = pnand %p1318_p0, %p43_p3  ;;  %s334_s28 = int_to_ptr.vmem [resolvable:$true] %s333_s28 }
  0x2a   : > { %s322_s1 = scalar_lea.sflag [#allocation3], %s321_s22  ;;  %s1388_s12 = scalar_lea.hbm %s1646_s23, 512 }
  0x2b   : > { %p1389_p12 = scmp.ne.s32.totalorder %s1646_s23, %s1388_s12  ;;  %p1390_p13 = pneg %p1648_p11 }
  0x2c   : > { %s1393_s30 = scalar_lea.hbm %s1962_s0, 1024  ;;  %p1394_p10 = scmp.lt.s32.totalorder %s1646_s23, %s1962_s0 }
  0x2d   : > { %p1391_p5 = pnand %p1390_p13, %p1389_p12  ;;  %p1395_p1 = scmp.lt.s32.totalorder %s1393_s30, %s1388_s12 }
  0x2f   : > { %p1392_p7 = pneg %p1391_p5  ;;  %p1396_p2 = por %p1395_p1, %p1394_p10 }
  0x31   : > { %p1397_p0 = pnand %p1396_p2, %p1392_p7 }
  0x33   : > { %1400 = shalt.err (!%p1397_p0)
}
  0x34   : > { %s1401_s27 = scalar_lea.vmem %s334_s28, 512  ;;  %s1487_s22 = smov [#allocation2]  }
  0x35   : > { %p1402_p3 = scmp.ne.s32.totalorder %s334_s28, %s1401_s27  ;;  %s1406_s24 = sshll.u32 %s1487_s22, 4  ;;  %s1407_s24 = int_to_ptr.vmem [resolvable:$false] %s1406_s24 }
  0x36   : > { %s1408_s16 = scalar_lea.vmem %s1407_s24, 1024  ;;  %p1409_p12 = scmp.lt.s32.totalorder %s334_s28, %s1407_s24 }
  0x37   : > { %p1404_p6 = pnand %p1402_p3, %p1390_p13  ;;  %p1410_p5 = scmp.lt.s32.totalorder %s1408_s16, %s1401_s27 }
  0x39   : > { %p1405_p9 = pneg %p1404_p6  ;;  %p1411_p4 = por %p1410_p5, %p1409_p12 }
  0x3b   : > { %p1412_p8 = pnand %p1411_p4, %p1405_p9 }
  0x3d   : > { %1415 = shalt.err (!%p1412_p8)
}
  0x3e   : > { %1312 = dma.hbm_to_vmem [thread:$0]  (!%p1648_p11), %s1646_s23, 512, %s334_s28, %s322_s1  }
  0x3f   : > { %p1995_p7 = scmp.ne.s32.totalorder %s1986_s21, 0 }
  0x40   : > { %s1669_s15 = sand.u32 (!%p1995_p7), 1, %s1476_s14   ;;  %p1996_p4 = scmp.ne.s32.totalorder (!%p1995_p7), %s1984_s19, 0 }
  0x41   : > { %342 = sbr.rel (%p1995_p7) target bundleno = 1503 (0x5df), region = 60  ;;  %s1267_s12 = sshll.u32 (!%p1995_p7), %s1669_s15, 5 }
  0x42   : > { %s345_s24 = scalar_lea.sflag (!%p1995_p7), [#allocation3], %s1669_s15  ;;  %s348_s16 = scalar_lea.vmem (!%p1995_p7), [#allocation2], %s1267_s12 }
  0x46   : > { %1459 = dma.done.wait (%p1996_p4), %s345_s24, 512  }
  0x47   : > { %1461 = vsyncadd (%p1996_p4), %s345_s24, 4294966784  ;;  %p1997_p6 = scmp.eq.s32.totalorder %s1571_s17, 0 }
  0x49   : > { %1463 = dma.done.wait (%p1997_p6), [#allocation6], 512   ;;  %p1998_p8 = pmov %p1997_p6 }
  0x4a   : > { %v1488_v0 = vmov 0   ;;  %v1687_v1 = vld [vmem:[%s348_s16 + $0x8] sm:$0xff]  ;;  %vm407_vm0 = vcmask 1043456   ;;  %v1689_v2 = vld [vmem:[%s348_s16 + $0x18] sm:$0xff]  ;;  %v1691_v3 = vld [vmem:[%s348_s16] sm:$0xff]  ;;  %vm403_vm1 = vcmask 64512   ;;  %v514_v25 = vlaneseq }
  0x4b   : > { %1465 = vsyncadd (%p1998_p8), [#allocation6], 4294966784  ;;  %452 = vmatprep.mubr.bf16.mxu0 %v1488_v0  ;;  %493 = vmatprep.mubr.bf16.mxu1 %v1488_v0  ;;  %v400_v4 = vpack.c.bf16 %v1687_v1, %v1687_v1  ;;  %v402_v5 = vpack.c.bf16 %v1689_v2, %v1689_v2  ;;  %v399_v6 = vpack.c.bf16 %v1691_v3, %v1691_v3  ;;  %v1699_v7 = vld [vmem:[%s348_s16 + $0x10] sm:$0xff]  ;;  %v398_v11 = vld [vmem:[%s1964_s2] sm:$0xf]  ;;  %s1489_s21 = smov 127  }
  0x4c   : > { %1360 = vset.pattern.permute.xlu0 %v1488_v0  ;;  %1361 = vset.pattern.permute.xlu1 %v1488_v0  ;;  %v401_v8 = vpack.c.bf16 %v1699_v7, %v1699_v7  ;;  %s1490_s23 = smov 1   ;;  %v583_v24 = vld [vmem:[%s1966_s4] sm:$0xff]  ;;  %v1729_v26 = vshrl.u32 %v514_v25, 7  ;;  %v1731_v27 = vand.u32 127, %v514_v25  ;;  %v1734_v30 = vld [vmem:[#allocation5 + $0x10] sm:$0x3f] }
  0x4d   : > { %1270 = vmatprep.subr.msk.bf16.mxu0 %vm407_vm0, %v400_v4  ;;  %1272 = vmatprep.subr.msk.bf16.mxu1 %vm407_vm0, %v402_v5  ;;  %v409_v9 = vsel %vm407_vm0, %v399_v6, 0  ;;  %v1736_v31 = vld [vmem:[#allocation5 + $0x18] sm:$0x3f]  ;;  %v1741_v35 = vld [vmem:[#allocation5 + $0x8] sm:$0x3f]  ;;  %vm589_vm4 = vcmask 195584  }
  0x4e   : > { %435 = vmatpush1.bf16.msra.mxu0 %v409_v9  ;;  %v415_v10 = vsel %vm407_vm0, %v401_v8, 0  ;;  %v556_v28 = vsub.s32 1, %v1729_v26  ;;  %vm549_vm2 = vcmp.lt.s32.totalorder %v1731_v27, 127  ;;  %v523_v36 = vsub.s32 0, %v1729_v26  ;;  %v1744_v37 = vld [vmem:[#allocation5] sm:$0x3f] }
  0x4f   : > { %476 = vmatpush1.bf16.msra.mxu1 %v415_v10  ;;  %vm516_vm3 = vcmp.lt.s32.totalorder %v1731_v27, 1  ;;  %s1491_s30 = smov 120   ;;  %s1492_s25 = smov 8   ;;  %vm732_vm5 = vcmp.lt.s32.totalorder %v1731_v27, 120  ;;  %vm699_vm6 = vcmp.lt.s32.totalorder %v1731_v27, 8  ;;  %vm885_vm7 = vcmp.lt.s32.totalorder %v1731_v27, 64 }
  0x50   : > { %v565_v33 = vrot.slane %v1734_v30, %v556_v28  ;;  %v569_v34 = vrot.slane %v1736_v31, %v556_v28  ;;  %v557_v42 = vrot.slane %v1744_v37, %v556_v28  ;;  %v561_v43 = vrot.slane %v1741_v35, %v556_v28  ;;  %s1493_s1 = smov 64   ;;  %s388_s29 = scalar_lea.vmem [#allocation7], %s1267_s12 }
  0x51   : > { %1271 = vmatmul.mubr.msk.bf16.vlgmr.msra.gmra.mxu0 %vm403_vm1, %v398_v11  ;;  %v528_v46 = vrot.slane %v1741_v35, %v523_v36  ;;  %v532_v56 = vrot.slane %v1734_v30, %v523_v36  ;;  %v524_v59 = vrot.slane %v1744_v37, %v523_v36  ;;  %v536_v60 = vrot.slane %v1736_v31, %v523_v36  ;;  %s1165_s12 = scalar_lea.sflag [#allocation4], %s1669_s15  ;;  %p1999_p11 = scmp.ne.s32.totalorder %s1993_s18, 0 }
  0x52   : > { %1273 = vmatmul.mubr.msk.bf16.vlgmr.msra.gmra.mxu1 %vm403_vm1, %v398_v11  ;;  %637 = vmatprep.mubr.bf16.mxu0 %v1488_v0  ;;  %s1494_s16 = smov [#allocation7]  }
  0x53   : > { %678 = vmatprep.mubr.bf16.mxu1 %v1488_v0 }
 0x111   : > { %v454_v12 = vpop.f32.mrf.mxu0 }
 0x112   : > { %v1714_v13 = vmax.f32 %v454_v12, 0.0  ;;  %v495_v14 = vpop.f32.mrf.mxu1 }
 0x113   : > { %v1716_v15 = vmax.f32 %v495_v14, 0.0  ;;  %v456_v16 = vpop.f32.mrf.mxu0 }
 0x114   : > { %v497_v17 = vpop.f32.mrf.mxu1  ;;  %541 = vrot.lane.b32.xlu0 %v1714_v13, %s1489_s21  ;;  %v503_v23 = vmax.f32 %v456_v16, 0.0 }
 0x115   : > { %545 = vrot.lane.b32.xlu1 %v1716_v15, %s1489_s21  ;;  %v458_v18 = vpop.f32.mrf.mxu0  ;;  %v1720_v20 = vmax.f32 %v497_v17, 0.0 }
 0x116   : > { %v499_v19 = vpop.f32.mrf.mxu1 }
 0x117   : > { %v459_v21 = vpop.f32.mrf.mxu0  ;;  %v574_v19 = vld [vmem:[%s1965_s3] sm:$0xf] }
 0x118   : > { %v500_v22 = vpop.f32.mrf.mxu1  ;;  %506 = vrot.lane.b32.xlu0 %v1714_v13, %s1490_s23 }
 0x119   : > { %547 = vrot.lane.b32.xlu1 %v1720_v20, %s1489_s21 }
 0x11c   : > { %543 = vrot.lane.b32.xlu0 %v503_v23, %s1489_s21 }
 0x11d   : > { %508 = vrot.lane.b32.xlu1 %v503_v23, %s1490_s23 }
 0x120   : > { %510 = vrot.lane.b32.xlu0 %v1716_v15, %s1490_s23 }
 0x121   : > { %512 = vrot.lane.b32.xlu1 %v1720_v20, %s1490_s23 }
 0x124   : > { %586 = vperm.xlu0 %1360, %v583_v24  }
 0x186   : > { %v542_v29 = vpop.permute.xlu0 %541 }
 0x187   : > { %v546_v32 = vpop.permute.xlu1 %545 }
 0x18a   : > { %v507_v38 = vpop.permute.xlu0 %506 }
 0x18b   : > { %v548_v39 = vpop.permute.xlu1 %547 }
 0x18c   : > { %v550_v40 = vsel %vm549_vm2, %v546_v32, %v548_v39  ;;  %v553_v41 = vsel %vm549_vm2, %v548_v39, %v542_v29 }
 0x18d   : > { %v572_v44 = vmul.f32 %v565_v33, %v550_v40  ;;  %v573_v45 = vmul.f32 %v569_v34, %v553_v41  ;;  %v766_v41 = vld [vmem:[%s1968_s6] sm:$0xff] }
 0x18e   : > { %v544_v47 = vpop.permute.xlu0 %543 }
 0x18f   : > { %v581_v48 = vpack.c.bf16 %v572_v44, %v572_v44  ;;  %v582_v49 = vpack.c.bf16 %v573_v45, %v573_v45  ;;  %v509_v50 = vpop.permute.xlu1 %508  ;;  %v551_v51 = vsel %vm549_vm2, %v544_v47, %v546_v32  ;;  %v552_v52 = vsel %vm549_vm2, %v542_v29, %v544_v47 }
 0x190   : > { %v519_v53 = vsel %vm516_vm3, %v507_v38, %v509_v50  ;;  %v570_v54 = vmul.f32 %v557_v42, %v552_v52  ;;  %v571_v55 = vmul.f32 %v561_v43, %v551_v51  ;;  %v739_v42 = vsub.s32 3, %v1729_v26 }
 0x191   : > { %v538_v57 = vmul.f32 %v528_v46, %v519_v53  ;;  %1276 = vmatprep.subr.msk.bf16.mxu1 %vm407_vm0, %v582_v49  ;;  %v600_v58 = vsel %vm407_vm0, %v581_v48, 0 }
 0x192   : > { %v579_v61 = vpack.c.bf16 %v570_v54, %v570_v54  ;;  %v580_v62 = vpack.c.bf16 %v571_v55, %v571_v55  ;;  %659 = vmatpush1.bf16.msra.mxu1 %v600_v58  ;;  %v511_v63 = vpop.permute.xlu0 %510  ;;  %v740_v45 = vrot.slane %v1744_v37, %v739_v42  ;;  %v744_v46 = vrot.slane %v1741_v35, %v739_v42 }
 0x193   : > { %v513_v4 = vpop.permute.xlu1 %512  ;;  %v518_v5 = vsel %vm516_vm3, %v509_v50, %v511_v63  ;;  %v576_v6 = vpack.c.bf16 %v503_v23, %v538_v57  ;;  %v748_v50 = vrot.slane %v1734_v30, %v739_v42  ;;  %v752_v53 = vrot.slane %v1736_v31, %v739_v42 }
 0x194   : > { %v520_v8 = vsel %vm516_vm3, %v513_v4, %v507_v38  ;;  %v517_v9 = vsel %vm516_vm3, %v511_v63, %v513_v4  ;;  %v539_v10 = vmul.f32 %v532_v56, %v518_v5  ;;  %1274 = vmatprep.subr.msk.bf16.mxu0 %vm407_vm0, %v580_v62  ;;  %v594_v11 = vsel %vm407_vm0, %v579_v61, 0 }
 0x195   : > { %v537_v12 = vmul.f32 %v524_v59, %v520_v8  ;;  %v540_v14 = vmul.f32 %v536_v60, %v517_v9  ;;  %618 = vmatpush1.bf16.msra.mxu0 %v594_v11  ;;  %v706_v54 = vsub.s32 2, %v1729_v26 }
 0x196   : > { %v577_v16 = vpack.c.bf16 %v1716_v15, %v539_v10  ;;  %619 = vmatprep.subr.bf16.mxu0 %v576_v6 }
 0x197   : > { %v575_v17 = vpack.c.bf16 %v1714_v13, %v537_v12  ;;  %v578_v18 = vpack.c.bf16 %v1720_v20, %v540_v14  ;;  %v711_v4 = vrot.slane %v1741_v35, %v706_v54  ;;  %v715_v10 = vrot.slane %v1734_v30, %v706_v54 }
 0x198   : > { %v707_v12 = vrot.slane %v1744_v37, %v706_v54 }
 0x199   : > { %660 = vmatprep.subr.bf16.mxu1 %v578_v18  ;;  %620 = vmatpush1.bf16.msra.mxu0 %v575_v17  ;;  %v719_v18 = vrot.slane %v1736_v31, %v706_v54 }
 0x19a   : > { %661 = vmatpush1.bf16.msra.mxu1 %v577_v16 }
 0x19c   : > { %1275 = vmatmul.mubr.msk.bf16.vlgmr.msra.gmra.mxu0 %vm589_vm4, %v574_v19 }
 0x19d   : > { %1277 = vmatmul.mubr.msk.bf16.vlgmr.msra.gmra.mxu1 %vm589_vm4, %v574_v19  ;;  %819 = vmatprep.mubr.bf16.mxu0 %v1488_v0 }
 0x19e   : > { %860 = vmatprep.mubr.bf16.mxu1 %v1488_v0 }
 0x19f   : > { %v587_v15 = vpop.permute.xlu0 %586 }
 0x25c   : > { %v639_v13 = vpop.f32.mrf.mxu0 }
 0x25d   : > { %v680_v21 = vpop.f32.mrf.mxu1  ;;  %v640_v20 = vadd.f32 %v639_v13, %v587_v15 }
 0x25e   : > { %v681_v22 = vadd.f32 %v680_v21, %v587_v15  ;;  %v641_v23 = vpop.f32.mrf.mxu0 }
 0x25f   : > { %v1783_v24 = vmax.f32 %v640_v20, 0.0  ;;  %v642_v25 = vadd.f32 %v641_v23, %v587_v15  ;;  %v682_v28 = vpop.f32.mrf.mxu1 }
 0x260   : > { %v1785_v29 = vmax.f32 %v681_v22, 0.0  ;;  %v643_v32 = vpop.f32.mrf.mxu0  ;;  %v683_v38 = vadd.f32 %v682_v28, %v587_v15 }
 0x261   : > { %v684_v33 = vpop.f32.mrf.mxu1  ;;  %724 = vrot.lane.b32.xlu1 %v1783_v24, %s1491_s30  ;;  %v1789_v36 = vmax.f32 %v642_v25, 0.0 }
 0x262   : > { %728 = vrot.lane.b32.xlu0 %v1785_v29, %s1491_s30  ;;  %v644_v34 = vpop.f32.mrf.mxu0  ;;  %v1793_v40 = vmax.f32 %v683_v38, 0.0  ;;  %v757_v33 = vld [vmem:[%s1967_s5] sm:$0xf] }
 0x263   : > { %v685_v39 = vpop.f32.mrf.mxu1 }
 0x265   : > { %726 = vrot.lane.b32.xlu1 %v1789_v36, %s1491_s30 }
 0x266   : > { %691 = vrot.lane.b32.xlu0 %v1783_v24, %s1492_s25 }
 0x269   : > { %730 = vrot.lane.b32.xlu1 %v1793_v40, %s1491_s30  ;;  %s1296_s30 = sshll.u32 %s1571_s17, 9 }
 0x26a   : > { %695 = vrot.lane.b32.xlu0 %v1785_v29, %s1492_s25  ;;  %s1925_s24 = scalar_lea.hbm %s1972_s10, %s1296_s30 }
 0x26d   : > { %693 = vrot.lane.b32.xlu1 %v1789_v36, %s1492_s25 }
 0x26e   : > { %769 = vperm.xlu0 %1360, %v766_v41  }
 0x271   : > { %697 = vrot.lane.b32.xlu1 %v1793_v40, %s1492_s25  ;;  %s1179_s25 = sshll.u32 %s388_s29, 4  ;;  %s1180_s25 = int_to_ptr.vmem [resolvable:$true] %s1179_s25 }
 0x272   : > { %s1416_s17 = scalar_lea.vmem %s1180_s25, 512 }
 0x273   : > { %p1417_p9 = scmp.ne.s32.totalorder %s1180_s25, %s1416_s17 }
 0x275   : > { %p1418_p13 = pnand %p1417_p9, %p1999_p11 }
 0x277   : > { %p1419_p10 = pneg %p1418_p13 }
 0x2d3   : > { %v725_v43 = vpop.permute.xlu1 %724 }
 0x2d4   : > { %v729_v44 = vpop.permute.xlu0 %728 }
 0x2d7   : > { %v727_v47 = vpop.permute.xlu1 %726 }
 0x2d8   : > { %v734_v48 = vsel %vm732_vm5, %v727_v47, %v729_v44  ;;  %v735_v49 = vsel %vm732_vm5, %v725_v43, %v727_v47  ;;  %v692_v55 = vpop.permute.xlu0 %691 }
 0x2d9   : > { %v753_v51 = vmul.f32 %v740_v45, %v735_v49  ;;  %v754_v52 = vmul.f32 %v744_v46, %v734_v48 }
 0x2db   : > { %v762_v56 = vpack.c.bf16 %v753_v51, %v753_v51  ;;  %v763_v57 = vpack.c.bf16 %v754_v52, %v754_v52  ;;  %v731_v58 = vpop.permute.xlu1 %730 }
 0x2dc   : > { %v733_v59 = vsel %vm732_vm5, %v729_v44, %v731_v58  ;;  %v736_v60 = vsel %vm732_vm5, %v731_v58, %v725_v43  ;;  %v696_v9 = vpop.permute.xlu0 %695 }
 0x2dd   : > { %v755_v61 = vmul.f32 %v748_v50, %v733_v59  ;;  %v756_v62 = vmul.f32 %v752_v53, %v736_v60  ;;  %1278 = vmatprep.subr.msk.bf16.mxu0 %vm407_vm0, %v763_v57  ;;  %v776_v63 = vsel %vm407_vm0, %v762_v56, 0  ;;  %v939_v59 = vld [vmem:[%s1970_s8] sm:$0xff]  ;;  %v912_v60 = vsub.s32 5, %v1729_v26 }
 0x2de   : > { %800 = vmatpush1.bf16.msra.mxu0 %v776_v63 }
 0x2df   : > { %v764_v5 = vpack.c.bf16 %v755_v61, %v755_v61  ;;  %v765_v6 = vpack.c.bf16 %v756_v62, %v756_v62  ;;  %v694_v8 = vpop.permute.xlu1 %693  ;;  %v892_v61 = vsub.s32 4, %v1729_v26  ;;  %v913_v63 = vrot.slane %v1744_v37, %v912_v60 }
 0x2e0   : > { %v702_v11 = vsel %vm699_vm6, %v692_v55, %v694_v8  ;;  %v701_v14 = vsel %vm699_vm6, %v694_v8, %v696_v9 }
 0x2e1   : > { %v721_v16 = vmul.f32 %v711_v4, %v702_v11  ;;  %1280 = vmatprep.subr.msk.bf16.mxu1 %vm407_vm0, %v765_v6  ;;  %v782_v17 = vsel %vm407_vm0, %v764_v5, 0  ;;  %v722_v13 = vmul.f32 %v715_v10, %v701_v14  ;;  %v897_v4 = vrot.slane %v1741_v35, %v892_v61 }
 0x2e2   : > { %841 = vmatpush1.bf16.msra.mxu1 %v782_v17  ;;  %v917_v6 = vrot.slane %v1741_v35, %v912_v60  ;;  %v893_v11 = vrot.slane %v1744_v37, %v892_v61  ;;  %v921_v14 = vrot.slane %v1734_v30, %v912_v60  ;;  %v901_v37 = vrot.slane %v1734_v30, %v892_v61 }
 0x2e3   : > { %v698_v19 = vpop.permute.xlu1 %697  ;;  %v759_v15 = vpack.c.bf16 %v1789_v36, %v721_v16  ;;  %v760_v32 = vpack.c.bf16 %v1785_v29, %v722_v13  ;;  %v925_v16 = vrot.slane %v1736_v31, %v912_v60 }
 0x2e4   : > { %v700_v21 = vsel %vm699_vm6, %v696_v9, %v698_v19  ;;  %v703_v20 = vsel %vm699_vm6, %v698_v19, %v692_v55 }
 0x2e5   : > { %v720_v22 = vmul.f32 %v707_v12, %v703_v20  ;;  %v723_v23 = vmul.f32 %v719_v18, %v700_v21  ;;  %801 = vmatprep.subr.bf16.mxu0 %v759_v15  ;;  %v905_v12 = vrot.slane %v1736_v31, %v892_v61 }
 0x2e7   : > { %v758_v25 = vpack.c.bf16 %v1783_v24, %v720_v22  ;;  %v761_v28 = vpack.c.bf16 %v1793_v40, %v723_v23 }
 0x2e9   : > { %802 = vmatpush1.bf16.msra.mxu0 %v758_v25  ;;  %842 = vmatprep.subr.bf16.mxu1 %v761_v28  ;;  %v770_v34 = vpop.permute.xlu0 %769 }
 0x2ea   : > { %843 = vmatpush1.bf16.msra.mxu1 %v760_v32 }
 0x2ec   : > { %1279 = vmatmul.mubr.msk.bf16.vlgmr.msra.gmra.mxu0 %vm589_vm4, %v757_v33 }
 0x2ed   : > { %1281 = vmatmul.mubr.msk.bf16.vlgmr.msra.gmra.mxu1 %vm589_vm4, %v757_v33  ;;  %992 = vmatprep.mubr.bf16.mxu0 %v1488_v0 }
 0x2ee   : > { %1033 = vmatprep.mubr.bf16.mxu1 %v1488_v0 }
 0x3ac   : > { %v821_v38 = vpop.f32.mrf.mxu0 }
 0x3ad   : > { %v822_v39 = vadd.f32 %v821_v38, %v770_v34  ;;  %v862_v41 = vpop.f32.mrf.mxu1 }
 0x3ae   : > { %v863_v42 = vadd.f32 %v862_v41, %v770_v34  ;;  %v823_v43 = vpop.f32.mrf.mxu0 }
 0x3af   : > { %v869_v44 = vadd.f32 %v822_v39, %v1783_v24  ;;  %v824_v45 = vadd.f32 %v823_v43, %v770_v34  ;;  %v864_v46 = vpop.f32.mrf.mxu1  ;;  %v930_v39 = vld [vmem:[%s1969_s7] sm:$0xf] }
 0x3b0   : > { %v865_v47 = vadd.f32 %v864_v46, %v770_v34  ;;  %v825_v48 = vpop.f32.mrf.mxu0  ;;  %v871_v50 = vadd.f32 %v863_v42, %v1785_v29 }
 0x3b1   : > { %v1846_v49 = vmax.f32 %v869_v44, 0.0  ;;  %v870_v51 = vadd.f32 %v824_v45, %v1789_v36  ;;  %v866_v52 = vpop.f32.mrf.mxu1 }
 0x3b2   : > { %v826_v53 = vpop.f32.mrf.mxu0  ;;  %v872_v55 = vadd.f32 %v865_v47, %v1793_v40  ;;  %v1854_v57 = vmax.f32 %v871_v50, 0.0 }
 0x3b3   : > { %v1850_v54 = vmax.f32 %v870_v51, 0.0  ;;  %877 = vrot.lane.b32.xlu1 %v1846_v49, %s1493_s1  ;;  %v867_v56 = vpop.f32.mrf.mxu1 }
 0x3b4   : > { %v1857_v58 = vmax.f32 %v872_v55, 0.0 }
 0x3b5   : > { %879 = vrot.lane.b32.xlu0 %v1850_v54, %s1493_s1 }
 0x3b7   : > { %881 = vrot.lane.b32.xlu1 %v1854_v57, %s1493_s1 }
 0x3b9   : > { %883 = vrot.lane.b32.xlu0 %v1857_v58, %s1493_s1  ;;  %s1420_s1 = sshll.u32 %s1494_s16, 4  ;;  %s1421_s1 = int_to_ptr.vmem [resolvable:$false] %s1420_s1 }
 0x3ba   : > { %s1422_s19 = scalar_lea.vmem %s1421_s1, 1024  ;;  %p1423_p1 = scmp.lt.s32.totalorder %s1180_s25, %s1421_s1 }
 0x3bb   : > { %942 = vperm.xlu1 %1361, %v939_v59   ;;  %p1424_p2 = scmp.lt.s32.totalorder %s1422_s19, %s1416_s17 }
 0x3bd   : > { %p1425_p0 = por %p1424_p2, %p1423_p1 }
 0x3bf   : > { %p1426_p3 = pnand %p1425_p0, %p1419_p10 }
 0x425   : > { %v878_v62 = vpop.permute.xlu1 %877 }
 0x427   : > { %v880_v5 = vpop.permute.xlu0 %879 }
 0x428   : > { %v888_v8 = vsel %vm885_vm7, %v878_v62, %v880_v5 }
 0x429   : > { %v926_v9 = vmul.f32 %v913_v63, %v888_v8  ;;  %v882_v10 = vpop.permute.xlu1 %881  ;;  %v907_v17 = vmul.f32 %v897_v4, %v888_v8 }
 0x42a   : > { %v887_v26 = vsel %vm885_vm7, %v880_v5, %v882_v10 }
 0x42b   : > { %v935_v18 = vpack.c.bf16 %v926_v9, %v926_v9  ;;  %v927_v19 = vmul.f32 %v917_v6, %v887_v26  ;;  %v884_v35 = vpop.permute.xlu0 %883  ;;  %v932_v28 = vpack.c.bf16 %v1850_v54, %v907_v17  ;;  %v908_v34 = vmul.f32 %v901_v37, %v887_v26 }
 0x42c   : > { %v886_v15 = vsel %vm885_vm7, %v882_v10, %v884_v35  ;;  %v889_v13 = vsel %vm885_vm7, %v884_v35, %v878_v62 }
 0x42d   : > { %v936_v21 = vpack.c.bf16 %v927_v19, %v927_v19  ;;  %v906_v20 = vmul.f32 %v893_v11, %v889_v13  ;;  %v909_v22 = vmul.f32 %v905_v12, %v886_v15  ;;  %v928_v23 = vmul.f32 %v921_v14, %v886_v15 }
 0x42e   : > { %v929_v25 = vmul.f32 %v925_v16, %v889_v13  ;;  %v949_v31 = vsel %vm407_vm0, %v935_v18, 0  ;;  %v933_v41 = vpack.c.bf16 %v1854_v57, %v908_v34 }
 0x42f   : > { %1282 = vmatprep.subr.msk.bf16.mxu0 %vm407_vm0, %v936_v21  ;;  %v937_v32 = vpack.c.bf16 %v928_v23, %v928_v23  ;;  %v931_v27 = vpack.c.bf16 %v1846_v49, %v906_v20  ;;  %v934_v38 = vpack.c.bf16 %v1857_v58, %v909_v22 }
 0x430   : > { %v938_v33 = vpack.c.bf16 %v929_v25, %v929_v25  ;;  %973 = vmatpush1.bf16.msra.mxu0 %v949_v31 }
 0x431   : > { %974 = vmatprep.subr.bf16.mxu0 %v932_v28  ;;  %v955_v30 = vsel %vm407_vm0, %v937_v32, 0 }
 0x432   : > { %1284 = vmatprep.subr.msk.bf16.mxu1 %vm407_vm0, %v938_v33 }
 0x433   : > { %1014 = vmatpush1.bf16.msra.mxu1 %v955_v30 }
 0x434   : > { %1015 = vmatprep.subr.bf16.mxu1 %v934_v38  ;;  %975 = vmatpush1.bf16.msra.mxu0 %v931_v27 }
 0x436   : > { %v943_v42 = vpop.permute.xlu1 %942 }
 0x437   : > { %1016 = vmatpush1.bf16.msra.mxu1 %v933_v41  ;;  %1283 = vmatmul.mubr.msk.bf16.vlgmr.msra.gmra.mxu0 %vm589_vm4, %v930_v39 }
 0x438   : > { %1106 = vmatprep.mubr.bf16.mxu0 %v1488_v0 }
 0x43a   : > { %1285 = vmatmul.mubr.msk.bf16.vlgmr.msra.gmra.mxu1 %vm589_vm4, %v930_v39 }
 0x43b   : > { %1147 = vmatprep.mubr.bf16.mxu1 %v1488_v0 }
 0x4f7   : > { %v994_v43 = vpop.f32.mrf.mxu0 }
 0x4f8   : > { %v995_v44 = vadd.f32 %v994_v43, %v943_v42 }
 0x4f9   : > { %v996_v45 = vpop.f32.mrf.mxu0 }
 0x4fa   : > { %v1042_v46 = vadd.f32 %v995_v44, %v1846_v49  ;;  %v997_v47 = vadd.f32 %v996_v45, %v943_v42  ;;  %v1035_v48 = vpop.f32.mrf.mxu1 }
 0x4fb   : > { %v1036_v50 = vadd.f32 %v1035_v48, %v943_v42  ;;  %v998_v51 = vpop.f32.mrf.mxu0 }
 0x4fc   : > { %v1043_v52 = vadd.f32 %v997_v47, %v1850_v54  ;;  %v1037_v53 = vpop.f32.mrf.mxu1  ;;  %v1046_v55 = vadd.f32 %v1042_v46, %v1783_v24 }
 0x4fd   : > { %v1044_v56 = vadd.f32 %v1036_v50, %v1854_v57  ;;  %v1038_v59 = vadd.f32 %v1037_v53, %v943_v42  ;;  %v999_v60 = vpop.f32.mrf.mxu0 }
 0x4fe   : > { %v1047_v0 = vadd.f32 %v1043_v52, %v1789_v36  ;;  %v1039_v61 = vpop.f32.mrf.mxu1  ;;  %v1050_v62 = vmax.f32 %v1046_v55, 0.0 }
 0x4ff   : > { %v1048_v63 = vadd.f32 %v1044_v56, %v1785_v29  ;;  %v1045_v49 = vadd.f32 %v1038_v59, %v1857_v58  ;;  %v1054_v29 = vld [vmem:[%s1971_s9] sm:$0xf] }
 0x500   : > { %v1051_v4 = vmax.f32 %v1047_v0, 0.0  ;;  %v1040_v5 = vpop.f32.mrf.mxu1  ;;  %v1055_v6 = vpack.c.bf16 %v1050_v62, %v1050_v62 }
 0x501   : > { %v1052_v8 = vmax.f32 %v1048_v63, 0.0  ;;  %v1049_v54 = vadd.f32 %v1045_v49, %v1793_v40 }
 0x502   : > { %v1056_v9 = vpack.c.bf16 %v1051_v4, %v1051_v4  ;;  %v1063_v57 = vsel %vm407_vm0, %v1055_v6, 0 }
 0x503   : > { %v1053_v24 = vmax.f32 %v1049_v54, 0.0  ;;  %v1057_v10 = vpack.c.bf16 %v1052_v8, %v1052_v8 }
 0x504   : > { %1286 = vmatprep.subr.msk.bf16.mxu0 %vm407_vm0, %v1056_v9 }
 0x505   : > { %v1058_v36 = vpack.c.bf16 %v1053_v24, %v1053_v24  ;;  %1089 = vmatpush1.bf16.msra.mxu0 %v1063_v57  ;;  %v1069_v58 = vsel %vm407_vm0, %v1057_v10, 0 }
 0x507   : > { %1288 = vmatprep.subr.msk.bf16.mxu1 %vm407_vm0, %v1058_v36 }
 0x508   : > { %1130 = vmatpush1.bf16.msra.mxu1 %v1069_v58  ;;  %1287 = vmatmul.mubr.msk.bf16.vlgmr.msra.gmra.mxu0 %vm403_vm1, %v1054_v29 }
 0x50b   : > { %1289 = vmatmul.mubr.msk.bf16.vlgmr.msra.gmra.mxu1 %vm403_vm1, %v1054_v29 }
 0x5c8   : > { %v1108_v40 = vpop.f32.mrf.mxu0 }
 0x5c9   : > { %v1109_v11 = vadd.f32 %v1108_v40, %v1691_v3 }
 0x5ca   : > { %v1110_v26 = vpop.f32.mrf.mxu0 }
 0x5cb   : > { %v1156_v12 = vmax.f32 %v1109_v11, 0.0  ;;  %v1149_v14 = vpop.f32.mrf.mxu1  ;;  %v1111_v16 = vadd.f32 %v1110_v26, %v1687_v1 }
 0x5cc   : > { %v1150_v17 = vadd.f32 %v1149_v14, %v1699_v7  ;;  %v1112_v18 = vpop.f32.mrf.mxu0 }
 0x5cd   : > { %1160 = vst [vmem:[%s388_s29] sm:$0xff] %v1156_v12  ;;  %v1157_v19 = vmax.f32 %v1111_v16, 0.0  ;;  %v1151_v35 = vpop.f32.mrf.mxu1 }
 0x5ce   : > { %v1158_v15 = vmax.f32 %v1150_v17, 0.0  ;;  %v1152_v3 = vadd.f32 %v1151_v35, %v1689_v2  ;;  %v1113_v13 = vpop.f32.mrf.mxu0 }
 0x5cf   : > { %1161 = vst [vmem:[%s388_s29 + $0x8] sm:$0xff] %v1157_v19  ;;  %v1153_v37 = vpop.f32.mrf.mxu1 }
 0x5d0   : > { %1162 = vst [vmem:[%s388_s29 + $0x10] sm:$0xff] %v1158_v15  ;;  %v1159_v1 = vmax.f32 %v1152_v3, 0.0 }
 0x5d1   : > { %v1154_v7 = vpop.f32.mrf.mxu1 }
 0x5d2   : > { %1163 = vst [vmem:[%s388_s29 + $0x18] sm:$0xff] %v1159_v1 }
 0x5d3   : > { %1429 = shalt.err (!%p1426_p3)
}
 0x5d4   : > { %s1430_s21 = scalar_lea.hbm %s1925_s24, 512  ;;  %s1434_s28 = scalar_lea.hbm %s1972_s10, 1024 }
 0x5d5   : > { %p1431_p12 = scmp.ne.s32.totalorder %s1925_s24, %s1430_s21  ;;  %p1435_p4 = scmp.lt.s32.totalorder %s1925_s24, %s1972_s10 }
 0x5d6   : > { %p1436_p6 = scmp.lt.s32.totalorder %s1434_s28, %s1430_s21 }
 0x5d7   : > { %p1432_p5 = pnand %p1431_p12, %p1999_p11 }
 0x5d8   : > { %p1437_p8 = por %p1436_p6, %p1435_p4 }
 0x5d9   : > { %p1433_p7 = pneg %p1432_p5 }
 0x5db   : > { %p1438_p9 = pnand %p1437_p8, %p1433_p7 }
 0x5dd   : > { %1441 = shalt.err (!%p1438_p9)
}
 0x5de   : > { %1303 = dma.vmem_to_hbm [thread:$0]  (%p1999_p11), %s1180_s25, 512, %s1925_s24, %s1165_s12  }
 0x5df PF: > { %s2000_s29 = sld [smem:[#allocation12_spill]]  ;;  %s1191_s30 = sand.u32 1, %s1472_s13  }
 0x5e0   : > { %p2001_p13 = scmp.ne.s32.totalorder %s1985_s20, 0  ;;  %s1192_s27 = scalar_lea.sflag [#allocation4], %s1191_s30 }
 0x5e5   : > { %p2002_p10 = scmp.ge.s32.totalorder %s2000_s29, 2 }
 0x5e7   : > { %p1314_p1 = pnand %p2002_p10, %p2001_p13 }
 0x5e9   : > { %p1315_p2 = pneg %p1314_p1 }
 0x5eb   : > { %1467 = dma.done.wait (%p1315_p2), %s1192_s27, 512  }
 0x5ec   : > { %1469 = vsyncadd (%p1315_p2), %s1192_s27, 4294966784  ;;  %s2003_s16 = sld [smem:[#allocation13_spill]]  ;;  %s2006_s13 = smov %s1476_s14 }
 0x5ed   : > { %s2004_s22 = sld [smem:[#allocation11_spill]] }
 0x5ee   : > { %s2005_s15 = sld [smem:[#allocation14_spill]] }
 0x5f2   : > { %p24_p0 = scmp.ge.s32.totalorder %s2003_s16, 4  }
 0x5f3   : > { %s2007_s14 = smov %s2004_s22 }
 0x5f4   :  { %26 = sbr.rel (!%p24_p0) target bundleno = 8 (0x8), region = 109 }
 0x5f9   :  { %1197 = vsyncpa [#allocation3], 1 }
 0x5fa   :  { %1199 = vsyncpa [#allocation3 + $0x1], 1 }
 0x5fb   :  { %1200 = vsyncpa [#allocation6], 1 }
 0x5fc   :  { %1201 = vsyncpa [#allocation4], 1 }
 0x5fd   :  { %1203 = vsyncpa [#allocation4 + $0x1], 1 }

</bundles_post_ra>
